<compile_context>
chip_gen: v7x
topology: tpu7x:2x2x1
jax: 0.10.0
libtpu: 0.0.40
codegen_flags: <defaults>
</compile_context>

<pallas_src>
import jax
import jax.numpy as jnp
from jax.experimental import pallas as pl
from jax.experimental.pallas import tpu as pltpu

EPS = 1e-5
LANE = 128
F32 = jnp.float32
BF16 = jnp.bfloat16


def _round_up(v, m):
    return (v + m - 1) // m * m


# --------------------------------------------------------------------------
# Kernels
# --------------------------------------------------------------------------
def _write_partial_stats(s_ref, y):
    """Per-tile BN partial stats in ONE (1,1,2,C) store: row 0 = mean, row 1 = centered M2."""
    c = y.shape[1]
    mean = jnp.mean(y, axis=0, keepdims=True)            # (1, C)
    d = y - mean
    m2 = jnp.sum(d * d, axis=0, keepdims=True)           # (1, C)
    s_ref[...] = jnp.concatenate([mean, m2], axis=0).reshape(1, 1, 2, c)


def _stage1_kernel(x_ref, w1_ref, y1_ref, s1_ref):
    """conv1 (1x1) + per-tile BN1 partial stats.  y1 stored bf16."""
    _, th, w, cin = x_ref.shape
    pp = w1_ref.shape[1]
    x = x_ref[...].reshape(th * w, cin)
    y = jnp.dot(x.astype(BF16), w1_ref[...], preferred_element_type=F32)
    y_b = y.astype(BF16)
    y1_ref[...] = y_b.reshape(1, th, w, pp)
    _write_partial_stats(s1_ref, y_b.astype(F32))


def _stage2_kernel(yc_ref, yu_ref, yd_ref, sc_ref, sh_ref, w2_ref, y2_ref, s2_ref):
    """BN1+ReLU on the halo'd tile, conv2 (3x3) as 3 accumulated K=3*Pp dots, BN2 stats."""
    _, th, w, pp = yc_ref.shape
    i = pl.program_id(1)
    last = pl.num_programs(1) - 1
    scale = sc_ref[...].reshape(1, 1, pp)
    shift = sh_ref[...].reshape(1, 1, pp)

    def bn_relu(v):
        return jnp.maximum(v.astype(F32) * scale + shift, 0.0)

    cur = bn_relu(yc_ref[...].reshape(th, w, pp))                       # (th, w, pp)
    up = bn_relu(yu_ref[...].reshape(1, w, pp)) * (i > 0).astype(F32)   # (1, w, pp)
    dn = bn_relu(yd_ref[...].reshape(1, w, pp)) * (i < last).astype(F32)

    # Halo'd (th+2, w, pp) tile and its two +-1 column-shifted copies (the SAME
    # padding's zero column is folded into the shift).  Only these two copies
    # touch the sublane axis at an unaligned offset; all further slicing is on
    # the leading (row) dim, which is a free address offset.
    full = jnp.concatenate([up, cur, dn], axis=0)
    zcol = jnp.zeros((th + 2, 1, pp), F32)
    left = jnp.concatenate([zcol, full[:, :w - 1, :]], axis=1)          # tap dx = 0
    right = jnp.concatenate([full[:, 1:, :], zcol], axis=1)             # tap dx = 2

    # Cast MXU operands to bf16 once, *before* any assembly.
    lb, cb, rb = left.astype(BF16), full.astype(BF16), right.astype(BF16)

    # 3 accumulated dots, one per dy; K = 3*pp with the dx taps concatenated on
    # the lane axis at aligned 128-lane boundaries.  acc += dot() lets the v7x
    # MRB accumulate in place.
    acc = jnp.zeros((th * w, pp), F32)
    for dy in range(3):
        k3 = jnp.concatenate(
            [lb[dy:dy + th], cb[dy:dy + th], rb[dy:dy + th]], axis=-1)  # (th, w, 3*pp)
        acc = acc + jnp.dot(k3.reshape(th * w, 3 * pp), w2_ref[dy],
                            preferred_element_type=F32)

    y_b = acc.astype(BF16)
    y2_ref[...] = y_b.reshape(1, th, w, pp)
    _write_partial_stats(s2_ref, y_b.astype(F32))


def _stage3_kernel(y2_ref, sc_ref, sh_ref, w3_ref, y3_ref, s3_ref):
    """BN2+ReLU, conv3 (1x1), per-tile BN3 partial stats.  y3 stored bf16."""
    _, th, w, pp = y2_ref.shape
    coutp = w3_ref.shape[1]
    a = jnp.maximum(
        y2_ref[...].astype(F32).reshape(th * w, pp) * sc_ref[...] + sh_ref[...], 0.0)
    y = jnp.dot(a.astype(BF16), w3_ref[...], preferred_element_type=F32)
    y_b = y.astype(BF16)
    y3_ref[...] = y_b.reshape(1, th, w, coutp)
    _write_partial_stats(s3_ref, y_b.astype(F32))


def _stage4_kernel(y3_ref, x_ref, sc_ref, sh_ref, o_ref):
    """BN3 + residual add + final ReLU (f32 output)."""
    _, th, w, c = y3_ref.shape
    y = y3_ref[...].astype(F32).reshape(th * w, c) * sc_ref[...] + sh_ref[...]
    o = jnp.maximum(y + x_ref[...].reshape(th * w, c), 0.0)
    o_ref[...] = o.reshape(1, th, w, c)


# --------------------------------------------------------------------------
# Wrapper
# --------------------------------------------------------------------------
def _bn_scale_shift(stats, cnt, gamma, beta):
    """Combine per-tile (mean, centered M2) into global biased BN stats (Chan combine)."""
    means = stats[:, :, 0, :]                              # (N, nH, C)
    m2s = stats[:, :, 1, :]
    n_tiles = means.shape[0] * means.shape[1]
    mean = jnp.mean(means, axis=(0, 1))                    # equal-count tiles
    m2 = jnp.sum(m2s, axis=(0, 1)) + cnt * jnp.sum((means - mean) ** 2, axis=(0, 1))
    var = m2 / (cnt * n_tiles)                             # biased variance (BN forward)
    scale = gamma * jax.lax.rsqrt(var + EPS)
    shift = beta - mean * scale
    return scale.reshape(1, -1), shift.reshape(1, -1)


def _pick_row_tile(n, h, w, pp):
    """Largest divisor of H whose stage-2 working set fits a conservative VMEM
    budget (sized for v7x's 64 MiB physical VMEM and v5e's 16 MiB default
    scope).  Keeps >= 2 row tiles when N == 1 so both v7x TensorCores get work.
    NOTE: prime H falls back to th=1 (correct but slow)."""
    budget = 6 * 1024 * 1024
    best = 1
    for th in range(1, h + 1):
        if h % th:
            continue
        rows = th * w
        b = (3 * (th + 2) * w * pp * 2      # left/center/right bf16 halo'd copies
             + rows * 3 * pp * 2            # per-dy K=3*pp patch (bf16)
             + rows * pp * 4                # f32 accumulator
             + 2 * 2 * rows * pp * 2)       # double-buffered bf16 in/out tiles
        if b <= budget:
            best = th
    if n == 1 and best == h:
        cands = [t for t in range(1, h) if h % t == 0 and h // t >= 2]
        if cands:
            best = max(cands)
    return best


def bottleneck_forward_nhwc(x_nhwc, torch_params, row_tile=None):
    """NHWC Bottleneck forward with training-mode (batch-statistics) BatchNorm.

    x_nhwc: (N, H, W, Cin) f32.  torch_params: PyTorch-layout parameters
    (OIHW conv weights without bias, 1-D BN gamma/beta).  Returns (N, H, W, Cout) f32.
    """
    (w1, g1, b1, w2, g2, b2, w3, g3, b3) = torch_params
    n, h, w, cin = x_nhwc.shape
    p = w1.shape[0]
    cout = w3.shape[0]
    assert cout == cin, "identity add requires inplanes == planes * expansion"

    cinp = _round_up(cin, LANE)
    pp = _round_up(p, LANE)
    coutp = _round_up(cout, LANE)

    if row_tile is None:
        row_tile = _pick_row_tile(n, h, w, pp)
    th = row_tile
    assert h % th == 0, "row_tile must divide H"
    nh = h // th

    # ---- lane-dense packing; skip the pad copy when already x128 aligned ----
    xp = x_nhwc.astype(F32)
    if cinp != cin:
        xp = jnp.pad(xp, ((0, 0), (0, 0), (0, 0), (0, cinp - cin)))
    w1p = (jnp.zeros((cinp, pp), F32)
           .at[:cin, :p].set(jnp.transpose(w1[:, :, 0, 0], (1, 0))).astype(BF16))
    w2hwio = jnp.transpose(w2, (2, 3, 1, 0))                      # (dy, dx, in, out)
    w2p = (jnp.zeros((3, 3, pp, pp), F32)
           .at[:, :, :p, :p].set(w2hwio)
           .reshape(3, 3 * pp, pp).astype(BF16))                  # per-dy (3*pp, pp)
    w3p = (jnp.zeros((pp, coutp), F32)
           .at[:p, :cout].set(jnp.transpose(w3[:, :, 0, 0], (1, 0))).astype(BF16))
    g1p = jnp.zeros((pp,), F32).at[:p].set(g1)
    b1p = jnp.zeros((pp,), F32).at[:p].set(b1)
    g2p = jnp.zeros((pp,), F32).at[:p].set(g2)
    b2p = jnp.zeros((pp,), F32).at[:p].set(b2)
    g3p = jnp.zeros((coutp,), F32).at[:cout].set(g3)
    b3p = jnp.zeros((coutp,), F32).at[:cout].set(b3)

    cparams = pltpu.CompilerParams(
        dimension_semantics=("parallel", "parallel"),   # 2-TC sharding on v7x
        # Explicit scoped-VMEM limit: v5e default is only 16 MiB, v7x physical
        # is 64 MiB; the row-tile heuristic keeps the working set well below this.
        vmem_limit_bytes=48 * 1024 * 1024)

    def act_spec(c):
        return pl.BlockSpec((1, th, w, c), lambda ni, i: (ni, i, 0, 0))

    def row_spec(c, row_of):
        return pl.BlockSpec((1, 1, w, c), lambda ni, i: (ni, row_of(i), 0, 0))

    def const_spec(shape):
        nd = len(shape)
        return pl.BlockSpec(shape, lambda ni, i: (0,) * nd)

    def stats_spec(c):
        return pl.BlockSpec((1, 1, 2, c), lambda ni, i: (ni, i, 0, 0))

    cnt = th * w

    # ---- stage 1: conv1 (1x1) + BN1 partial stats ----
    y1, s1 = pl.pallas_call(
        _stage1_kernel,
        out_shape=(jax.ShapeDtypeStruct((n, h, w, pp), BF16),
                   jax.ShapeDtypeStruct((n, nh, 2, pp), F32)),
        grid_spec=pltpu.PrefetchScalarGridSpec(
            num_scalar_prefetch=0, grid=(n, nh),
            in_specs=[act_spec(cinp), const_spec((cinp, pp))],
            out_specs=[act_spec(pp), stats_spec(pp)]),
        compiler_params=cparams,
    )(xp, w1p)
    sc1, sh1 = _bn_scale_shift(s1, cnt, g1p, b1p)

    # ---- stage 2: BN1+ReLU, conv2 (3x3) + BN2 partial stats ----
    y2, s2 = pl.pallas_call(
        _stage2_kernel,
        out_shape=(jax.ShapeDtypeStruct((n, h, w, pp), BF16),
                   jax.ShapeDtypeStruct((n, nh, 2, pp), F32)),
        grid_spec=pltpu.PrefetchScalarGridSpec(
            num_scalar_prefetch=0, grid=(n, nh),
            in_specs=[act_spec(pp),
                      row_spec(pp, lambda i: jnp.maximum(i * th - 1, 0)),
                      row_spec(pp, lambda i: jnp.minimum(i * th + th, h - 1)),
                      const_spec((1, pp)), const_spec((1, pp)),
                      const_spec((3, 3 * pp, pp))],
            out_specs=[act_spec(pp), stats_spec(pp)]),
        compiler_params=cparams,
    )(y1, y1, y1, sc1, sh1, w2p)
    sc2, sh2 = _bn_scale_shift(s2, cnt, g2p, b2p)

    # ---- stage 3: BN2+ReLU, conv3 (1x1) + BN3 partial stats ----
    y3, s3 = pl.pallas_call(
        _stage3_kernel,
        out_shape=(jax.ShapeDtypeStruct((n, h, w, coutp), BF16),
                   jax.ShapeDtypeStruct((n, nh, 2, coutp), F32)),
        grid_spec=pltpu.PrefetchScalarGridSpec(
            num_scalar_prefetch=0, grid=(n, nh),
            in_specs=[act_spec(pp), const_spec((1, pp)), const_spec((1, pp)),
                      const_spec((pp, coutp))],
            out_specs=[act_spec(coutp), stats_spec(coutp)]),
        compiler_params=cparams,
    )(y2, sc2, sh2, w3p)
    sc3, sh3 = _bn_scale_shift(s3, cnt, g3p, b3p)

    # ---- stage 4: BN3 + residual add + ReLU ----
    out = pl.pallas_call(
        _stage4_kernel,
        out_shape=jax.ShapeDtypeStruct((n, h, w, coutp), F32),
        grid_spec=pltpu.PrefetchScalarGridSpec(
            num_scalar_prefetch=0, grid=(n, nh),
            in_specs=[act_spec(coutp), act_spec(cinp),
                      const_spec((1, coutp)), const_spec((1, coutp))],
            out_specs=act_spec(coutp)),
        compiler_params=cparams,
    )(y3, xp, sc3, sh3)

    if coutp != cout:
        out = out[..., :cout]
    return out


def bottleneck_forward(x_nchw, torch_params, row_tile=None):
    """PyTorch-contract wrapper: NCHW in, NCHW out."""
    x = jnp.transpose(x_nchw, (0, 2, 3, 1))
    out = bottleneck_forward_nhwc(x, torch_params, row_tile=row_tile)
    return jnp.transpose(out, (0, 3, 1, 2))


# --------------------------------------------------------------------------
# Pure-JAX reference (self-check)
# --------------------------------------------------------------------------
def _ref_forward(x_nchw, torch_params, matmul_dtype=jnp.float32,
                 round_intermediates=False):
    (w1, g1, b1, w2, g2, b2, w3, g3, b3) = torch_params
    x = jnp.transpose(x_nchw, (0, 2, 3, 1))

    def conv(y, w_oihw, pad):
        wk = jnp.transpose(w_oihw, (2, 3, 1, 0))            # OIHW -> HWIO
        out = jax.lax.conv_general_dilated(
            y.astype(matmul_dtype), wk.astype(matmul_dtype),
            window_strides=(1, 1), padding=pad,
            dimension_numbers=('NHWC', 'HWIO', 'NHWC'),
            preferred_element_type=jnp.float32)
        if round_intermediates:                              # model bf16 HBM storage
            out = out.astype(jnp.bfloat16).astype(jnp.float32)
        return out

    def bn(y, g, b, relu):
        mean = jnp.mean(y, axis=(0, 1, 2), keepdims=True)
        var = jnp.mean((y - mean) ** 2, axis=(0, 1, 2), keepdims=True)
        o = (y - mean) * jax.lax.rsqrt(var + EPS) * g + b
        return jnp.maximum(o, 0.0) if relu else o

    y = bn(conv(x, w1, 'VALID'), g1, b1, True)
    y = bn(conv(y, w2, 'SAME'), g2, b2, True)
    y = bn(conv(y, w3, 'VALID'), g3, b3, False)
    out = jnp.maximum(y + x, 0.0)
    return jnp.transpose(out, (0, 3, 1, 2))


if __name__ == "__main__":
    # Small test: inplanes=16, planes=4 (expansion 4 -> 16 out channels), N=2, 16x16.
    inplanes, planes, N, H, W = 16, 4, 2, 16, 16
    Cout = planes * 4

    key = jax.random.PRNGKey(0)
    ks = jax.random.split(key, 10)

    x = jax.random.normal(ks[0], (N, inplanes, H, W), jnp.float32)

    w1 = 0.1 * jax.random.normal(ks[1], (planes, inplanes, 1, 1), jnp.float32)
    w2 = 0.1 * jax.random.normal(ks[2], (planes, planes, 3, 3), jnp.float32)
    w3 = 0.1 * jax.random.normal(ks[3], (Cout, planes, 1, 1), jnp.float32)
    g1 = 1.0 + 0.1 * jax.random.normal(ks[4], (planes,), jnp.float32)
    b1 = 0.1 * jax.random.normal(ks[5], (planes,), jnp.float32)
    g2 = 1.0 + 0.1 * jax.random.normal(ks[6], (planes,), jnp.float32)
    b2 = 0.1 * jax.random.normal(ks[7], (planes,), jnp.float32)
    g3 = 1.0 + 0.1 * jax.random.normal(ks[8], (Cout,), jnp.float32)
    b3 = 0.1 * jax.random.normal(ks[9], (Cout,), jnp.float32)
    params = (w1, g1, b1, w2, g2, b2, w3, g3, b3)

    out = bottleneck_forward(x, params)           # auto row_tile -> whole-image tiles here
    out = jax.block_until_ready(out)

    # Matched-precision reference (bf16 conv operands + bf16-rounded intermediates,
    # f32 accumulation + f32 BN): same compute recipe as the kernel -> tight tolerance.
    ref_bf16 = _ref_forward(x, params, matmul_dtype=jnp.bfloat16, round_intermediates=True)
    # Pure-f32 module semantics: loose sanity bound (difference is only bf16 rounding).
    ref_f32 = _ref_forward(x, params, matmul_dtype=jnp.float32)

    assert out.shape == (N, inplanes, H, W)
    assert jnp.allclose(out, ref_bf16, atol=1e-2, rtol=1e-2), (
        "mismatch vs matched-precision reference, max |diff| = %g"
        % float(jnp.max(jnp.abs(out - ref_bf16))))
    assert jnp.allclose(out, ref_f32, atol=2e-1, rtol=2e-1), (
        "mismatch vs f32 reference, max |diff| = %g"
        % float(jnp.max(jnp.abs(out - ref_f32))))

    print("KERNEL_OK")
</pallas_src>

<mosaic_0001>
module attributes {stable_mosaic.version = 11 : i64} {
  func.func @_stage1_kernel(%arg0: i32, %arg1: i32, %arg2: memref<1x16x16x128xf32, #tpu.memory_space<vmem>>, %arg3: memref<128x128xbf16, #tpu.memory_space<vmem>>, %arg4: memref<1x16x16x128xbf16, #tpu.memory_space<vmem>>, %arg5: memref<1x1x2x128xf32, #tpu.memory_space<vmem>>) attributes {dimension_semantics = [#tpu.dimension_semantics<parallel>, #tpu.dimension_semantics<parallel>], iteration_bounds = array<i64: 2, 1>, scalar_prefetch = 0 : i64, scratch_operands = 0 : i64, tpu.core_type = #tpu.core_type<tc>, window_params = [{transform_indices = @transform_0, window_bounds = array<i64: 1, 16, 16, 128>}, {pipeline_mode = #tpu.pipeline_mode<synchronous>, transform_indices = @transform_1, window_bounds = array<i64: 128, 128>}, {transform_indices = @transform_2, window_bounds = array<i64: 1, 16, 16, 128>}, {transform_indices = @transform_3, window_bounds = array<i64: 1, 1, 2, 128>}]} {
    %c0 = arith.constant 0 : index
    %c0_0 = arith.constant 0 : index
    %c0_1 = arith.constant 0 : index
    %c0_2 = arith.constant 0 : index
    %0 = vector.load %arg2[%c0, %c0_0, %c0_1, %c0_2] : memref<1x16x16x128xf32, #tpu.memory_space<vmem>>, vector<1x16x16x128xf32>
    %1 = vector.shape_cast %0 : vector<1x16x16x128xf32> to vector<256x128xf32>
    %2 = arith.truncf %1 : vector<256x128xf32> to vector<256x128xbf16>
    %c0_3 = arith.constant 0 : index
    %c0_4 = arith.constant 0 : index
    %3 = vector.load %arg3[%c0_3, %c0_4] : memref<128x128xbf16, #tpu.memory_space<vmem>>, vector<128x128xbf16>
    %cst = arith.constant dense<0.000000e+00> : vector<256x128xf32>
    %4 = tpu.matmul %2, %3, %cst {dimension_numbers = #tpu.dot_dimension_numbers<[1], [0], [0], [1], [0, 0, 1, 1], [], []>} : vector<256x128xbf16>, vector<128x128xbf16>, vector<256x128xf32> -> vector<256x128xf32>
    %5 = arith.truncf %4 : vector<256x128xf32> to vector<256x128xbf16>
    %6 = vector.shape_cast %5 : vector<256x128xbf16> to vector<1x16x16x128xbf16>
    %c0_5 = arith.constant 0 : index
    %c0_6 = arith.constant 0 : index
    %c0_7 = arith.constant 0 : index
    %c0_8 = arith.constant 0 : index
    %7 = vector.load %arg4[%c0_5, %c0_6, %c0_7, %c0_8] : memref<1x16x16x128xbf16, #tpu.memory_space<vmem>>, vector<1x16x16x128xbf16>
    tpu.vector_store %arg4[%c0_5, %c0_6, %c0_7, %c0_8], %6 {strides = array<i32>} : memref<1x16x16x128xbf16, #tpu.memory_space<vmem>>, vector<1x16x16x128xbf16>,
    %8 = arith.extf %5 : vector<256x128xbf16> to vector<256x128xf32>
    %cst_9 = arith.constant dense<0.000000e+00> : vector<128xf32>
    %9 = vector.multi_reduction <add>, %8, %cst_9 [0] : vector<256x128xf32> to vector<128xf32>
    %10 = vector.shape_cast %9 : vector<128xf32> to vector<1x128xf32>
    %cst_10 = arith.constant 2.560000e+02 : f32
    %11 = vector.broadcast %cst_10 : f32 to vector<1x128xf32>
    %12 = arith.divf %10, %11 : vector<1x128xf32>
    %13 = vector.broadcast %12 : vector<1x128xf32> to vector<256x128xf32>
    %14 = arith.subf %8, %13 : vector<256x128xf32>
    %15 = arith.mulf %14, %14 : vector<256x128xf32>
    %cst_11 = arith.constant dense<0.000000e+00> : vector<128xf32>
    %16 = vector.multi_reduction <add>, %15, %cst_11 [0] : vector<256x128xf32> to vector<128xf32>
    %17 = vector.shape_cast %16 : vector<128xf32> to vector<1x128xf32>
    %18 = tpu.concatenate %12, %17 in 0 : vector<1x128xf32>, vector<1x128xf32> -> vector<2x128xf32>
    %19 = vector.shape_cast %18 : vector<2x128xf32> to vector<1x1x2x128xf32>
    %c0_12 = arith.constant 0 : index
    %c0_13 = arith.constant 0 : index
    %c0_14 = arith.constant 0 : index
    %c0_15 = arith.constant 0 : index
    %20 = vector.load %arg5[%c0_12, %c0_13, %c0_14, %c0_15] : memref<1x1x2x128xf32, #tpu.memory_space<vmem>>, vector<1x1x2x128xf32>
    tpu.vector_store %arg5[%c0_12, %c0_13, %c0_14, %c0_15], %19 {strides = array<i32>} : memref<1x1x2x128xf32, #tpu.memory_space<vmem>>, vector<1x1x2x128xf32>,
    return
  }
  func.func @transform_0(%arg0: i32, %arg1: i32) -> (i32, i32, i32, i32) {
    %c0_i32 = arith.constant 0 : i32
    %c0_i32_0 = arith.constant 0 : i32
    %c0_i32_1 = arith.constant 0 : i32
    return %arg0, %arg1, %c0_i32, %c0_i32_0 : i32, i32, i32, i32
  }
  func.func @transform_1(%arg0: i32, %arg1: i32) -> (i32, i32) {
    %c0_i32 = arith.constant 0 : i32
    %c0_i32_0 = arith.constant 0 : i32
    %c0_i32_1 = arith.constant 0 : i32
    return %c0_i32, %c0_i32_0 : i32, i32
  }
  func.func @transform_2(%arg0: i32, %arg1: i32) -> (i32, i32, i32, i32) {
    %c0_i32 = arith.constant 0 : i32
    %c0_i32_0 = arith.constant 0 : i32
    %c0_i32_1 = arith.constant 0 : i32
    return %arg0, %arg1, %c0_i32, %c0_i32_0 : i32, i32, i32, i32
  }
  func.func @transform_3(%arg0: i32, %arg1: i32) -> (i32, i32, i32, i32) {
    %c0_i32 = arith.constant 0 : i32
    %c0_i32_0 = arith.constant 0 : i32
    %c0_i32_1 = arith.constant 0 : i32
    return %arg0, %arg1, %c0_i32, %c0_i32_0 : i32, i32, i32, i32
  }
}

</mosaic_0001>

<bundles_post_ra>
// kernel: tpu_custom_call.1
= control target key start
LH: loop header
LB: loop body
LE: loop exit
PB: predicated region body
PF: predicated region fallthrough
CT: control target
= control target key end

     0   :  { %9 = vsyncpa [#allocation3], 0  ;;  %s2137_s0 = inlined_call_operand.hbm [shape: f32[2,16,16,128], index: 0, kind: input, shape index: {}]   ;;  %s2138_s1 = inlined_call_operand.hbm [shape: bf16[128,128], index: 1, kind: input, shape index: {}]   ;;  %s2139_s2 = inlined_call_operand.hbm [shape: bf16[2,16,16,128], index: 2, kind: output, shape index: {0}]   ;;  %s2140_s3 = inlined_call_operand.hbm [shape: f32[2,1,2,128], index: 3, kind: output, shape index: {1}]  }
   0x1   :  { %11 = vsyncpa [#allocation3 + $0x1], 0 }
   0x2   :  { %12 = vsyncpa [#allocation6], 0 }
   0x3   :  { %13 = vsyncpa [#allocation4], 0 }
   0x4   :  { %15 = vsyncpa [#allocation4 + $0x1], 0 }
   0x5   :  { %16 = vsyncpa [#allocation9], 0 }
   0x6   :  { %18 = vsyncpa [#allocation9 + $0x1], 0  ;;  %s1590_s12 = smov 0   ;;  %s1592_s13 = smov 0  }
   0x7   :  { %s1594_s14 = smov 0   ;;  %s1596_s15 = smov 0  }
   0x8   :  { %s1598_s16 = smov 0   ;;  %s1600_s17 = smov 0  }
   0x9 LB: > { %s1013_s18 = sadd.s32 4294967295, %s1558_s17   ;;  %s1014_s19 = sadd.s32 4294967294, %s1558_s17   ;;  %s1558_s17 = sphi %s1600_s17, %s24_s17   ;;  %s1554_s16 = sphi %s1598_s16, %s2164_s16   ;;  %s1550_s15 = sphi %s1596_s15, %s2163_s15   ;;  %s1546_s14 = sphi %s1594_s14, %s2162_s14   ;;  %s1542_s13 = sphi %s1592_s13, %s2161_s13   ;;  %s1538_s12 = sphi %s1590_s12, %s2160_s12  }
   0xa   : > { %p58_p0 = scmp.ne.s32.totalorder %s1542_s13, %s1538_s12  ;;  %p1624_p1 = scmp.eq.s32.totalorder %s1013_s18, 0 }
   0xb   : > { %p1628_p2 = scmp.eq.s32.totalorder %s1013_s18, 1  ;;  %p111_p3 = scmp.eq.s32.totalorder %s1014_s19, 1 }
   0xc   : > { %s2145_s20 = scalar_select %p1624_p1, 1, 0 }
   0xd   : > { %s2146_s21 = scalar_select %p1628_p2, 1, 0 }
   0xe   : > { %p1634_p4 = por %p1624_p1, %p58_p0  ;;  %p1015_p5 = scmp.ge.s32.totalorder %s1558_s17, 1 }
   0xf   : > { %p1639_p6 = por %p111_p3, %p58_p0  ;;  %p146_p7 = scmp.lt.s32.totalorder %s1558_s17, 3 }
  0x10   : > { %s2147_s22 = scalar_select %p1634_p4, 1, 0 }
  0x11   : > { %s2148_s23 = scalar_select %p1639_p6, 1, 0 }
  0x12   : > { %p1644_p8 = pnand %p1015_p5, %p146_p7  ;;  %s1560_s25 = smov [#allocation5]  }
  0x13   : > { %s158_s26 = sshll.u32 %s1560_s25, 4  ;;  %s36_s28 = sadd.s32 1, %s1554_s16  ;;  %s159_s26 = int_to_ptr.vmem [resolvable:$true] %s158_s26 }
  0x14   : > { %s2149_s24 = scalar_select %p1644_p8, 1, 0 }
  0x15   : > { %p1300_p9 = pneg %p1644_p8  ;;  %s1382_s4 = scalar_lea.hbm %s2138_s1, 1024 }
  0x16   : > { %p1383_p12 = scmp.ne.s32.totalorder %s2138_s1, %s1382_s4  ;;  %p1389_p5 = scmp.lt.u32.totalorder %s1382_s4, %s2138_s1 }
  0x17   : > { %p1653_p11 = pnand %p1300_p9, %p1624_p1 }
  0x19   : > { %p1384_p13 = pneg %p1653_p11 }
  0x1b   : > { %p1385_p0 = pnand %p1384_p13, %p1383_p12 }
  0x1d   : > { %p1386_p3 = pneg %p1385_p0 }
  0x1f   : > { %p1391_p7 = pnand %p1389_p5, %p1386_p3 }
  0x21   : > { %1394 = shalt.err (!%p1391_p7)
}
  0x22   : > { %s1395_s9 = scalar_lea.vmem %s159_s26, 1024  ;;  %p1403_p1 = scmp.lt.s32.totalorder %s159_s26, %s159_s26 }
  0x23   : > { %p1396_p9 = scmp.ne.s32.totalorder %s159_s26, %s1395_s9  ;;  %p1404_p4 = scmp.lt.s32.totalorder %s1395_s9, %s1395_s9 }
  0x25   : > { %p1398_p10 = pnand %p1396_p9, %p1384_p13  ;;  %p1405_p8 = por %p1404_p4, %p1403_p1 }
  0x27   : > { %p1399_p6 = pneg %p1398_p10 }
  0x29   : > { %p1406_p2 = pnand %p1405_p8, %p1399_p6 }
  0x2b   : > { %1409 = shalt.err (!%p1406_p2)
}
  0x2c   : > { %s1561_s10 = smov 64   ;;  %s1562_s11 = smov 4  }
  0x2d   : > { %1303 = dma.hbm_to_vmem [thread:$0]  (!%p1653_p11), %s2138_s1, 1024, %s159_s26, [#allocation6], %s1561_s10, %s1561_s10, %s1562_s11  }
  0x2e   : > { %p38_p1 = scmp.ge.s32.totalorder %s36_s28, 2  ;;  %s45_s25 = sadd.s32 1, %s1546_s14 }
  0x2f   : > { %p52_p2 = scmp.ne.s32.totalorder %s1546_s14, %s1542_s13  ;;  %p53_p4 = scmp.eq.s32.totalorder %s1558_s17, 0 }
  0x30   : > { %s2166_s28 = smov (%p38_p1, %s36_s28), 0  ;;  %p2152_p8 = scmp.ne.s32.totalorder %s2146_s21, 0 }
  0x31   : > { %p1680_p6 = por %p53_p4, %p52_p2  ;;  %s40_s27 = ssub.s32 %s1554_s16, %s2166_s28 }
  0x32   : > { %p1686_p10 = por %p2152_p8, %p52_p2  ;;  %p1316_p12 = scmp.lt.s32.totalorder %s1558_s17, 2 }
  0x33   : > { %p43_p11 = scmp.eq.s32.totalorder %s40_s27, 0  ;;  %s172_s26 = sand.u32 1, %s1546_s14  }
  0x34   : > { %s1018_s4 = sshll.u32 %s172_s26, 8  ;;  %s1073_s6 = sshll.u32 %s1554_s16, 12 }
  0x35   : > { %s1695_s5 = scalar_select %p43_p11, %s1546_s14, %s45_s25  }
  0x36   : > { %s1701_s9 = scalar_lea.hbm %s2137_s0, %s1073_s6  ;;  %s176_s21 = scalar_lea.vmem [#allocation2], %s1018_s4 }
  0x37   : > { %s186_s10 = sshll.u32 %s176_s21, 4  ;;  %p1707_p13 = pnand %p1316_p12, %p1680_p6  ;;  %s1703_s10 = int_to_ptr.vmem [resolvable:$true] %s186_s10 }
  0x38   : > { %s1711_s18 = scalar_lea.sflag [#allocation3], %s172_s26  ;;  %s1410_s19 = scalar_lea.hbm %s1701_s9, 4096 }
  0x39   : > { %p1411_p0 = scmp.ne.s32.totalorder %s1701_s9, %s1410_s19  ;;  %p1412_p3 = pneg %p1707_p13 }
  0x3a   : > { %s1415_s29 = scalar_lea.hbm %s2137_s0, 8192  ;;  %p1416_p9 = scmp.lt.u32.totalorder %s1701_s9, %s2137_s0 }
  0x3b   : > { %p1413_p5 = pnand %p1412_p3, %p1411_p0  ;;  %p1417_p1 = scmp.lt.u32.totalorder %s1415_s29, %s1410_s19 }
  0x3c   : > { %p1419_p4 = scmp.lt.u32.totalorder %s1410_s19, %s1701_s9 }
  0x3d   : > { %p1414_p7 = pneg %p1413_p5  ;;  %p1418_p2 = por %p1417_p1, %p1416_p9 }
  0x3f   : > { %p1420_p6 = por %p1419_p4, %p1418_p2 }
  0x41   : > { %p1421_p8 = pnand %p1420_p6, %p1414_p7 }
  0x43   : > { %1424 = shalt.err (!%p1421_p8)
}
  0x44   : > { %s1425_s26 = scalar_lea.vmem %s1703_s10, 4096  ;;  %s1563_s7 = smov [#allocation2]  }
  0x45   : > { %p1426_p12 = scmp.ne.s32.totalorder %s1703_s10, %s1425_s26  ;;  %s1430_s8 = sshll.u32 %s1563_s7, 4  ;;  %s1431_s8 = int_to_ptr.vmem [resolvable:$false] %s1430_s8 }
  0x46   : > { %s1432_s21 = scalar_lea.vmem %s1431_s8, 8192  ;;  %p1433_p5 = scmp.lt.s32.totalorder %s1703_s10, %s1431_s8 }
  0x47   : > { %p1428_p11 = pnand %p1426_p12, %p1412_p3  ;;  %p1434_p9 = scmp.lt.s32.totalorder %s1432_s21, %s1425_s26 }
  0x49   : > { %p1429_p0 = pneg %p1428_p11  ;;  %p1435_p1 = por %p1434_p9, %p1433_p5 }
  0x4b   : > { %p1436_p2 = pnand %p1435_p1, %p1429_p0 }
  0x4d   : > { %1439 = shalt.err (!%p1436_p2)
}
  0x4e   : > { %s1564_s19 = smov 128   ;;  %s1565_s25 = smov 8  }
  0x4f   : > { %1307 = dma.hbm_to_vmem [thread:$0]  (!%p1707_p13), %s1701_s9, 4096, %s1703_s10, %s1711_s18, %s1564_s19, %s1564_s19, %s1565_s25  }
  0x50   : > { %p2155_p3 = scmp.ne.s32.totalorder %s2149_s24, 0 }
  0x51   : > { %s1742_s27 = sand.u32 (!%p2155_p3), 1, %s1542_s13   ;;  %p2156_p7 = scmp.ne.s32.totalorder (!%p2155_p3), %s2147_s22, 0 }
  0x52   : > { %198 = sbr.rel (%p2155_p3) target bundleno = 527 (0x20f), region = 28  ;;  %s1022_s29 = sshll.u32 (!%p2155_p3), %s1742_s27, 8 }
  0x53   : > { %s201_s4 = scalar_lea.sflag (!%p2155_p3), [#allocation3], %s1742_s27  ;;  %s1746_s6 = scalar_lea.vmem (!%p2155_p3), [#allocation2], %s1022_s29 }
  0x59   : > { %1521 = dma.done.wait (%p2156_p7), %s201_s4, 4096  }
  0x5a   : > { %1523 = vsyncadd (%p2156_p7), %s201_s4, 4294963200  ;;  %p2157_p13 = scmp.ne.s32.totalorder %s2145_s20, 0 }
  0x5c   : > { %1525 = dma.done.wait (%p2157_p13), [#allocation6], 1024  }
  0x5d   : > { %1527 = vsyncadd (%p2157_p13), [#allocation6], 4294966272  ;;  %v1374_v0 = vld [vmem:[#allocation5] sm:$0xff]   ;;  %v1375_v1 = vld [vmem:[#allocation5 + $0x8] sm:$0xff]   ;;  %s1024_s20 = sshll.u32 %s1742_s27, 7  ;;  %s1106_s24 = sshll.u32 %s1550_s15, 11 }
  0x5e   : > { %1226 = vmatprep.subr.bf16.mxu0 %v1374_v0  ;;  %1274 = vmatprep.subr.bf16.mxu1 %v1374_v0  ;;  %v1376_v2 = vld [vmem:[#allocation5 + $0x10] sm:$0xff]   ;;  %v1377_v3 = vld [vmem:[#allocation5 + $0x18] sm:$0xff]   ;;  %v239_v4 = vld [vmem:[%s1746_s6] sm:$0xff]  ;;  %s1795_s22 = scalar_lea.vmem [#allocation7], %s1024_s20  ;;  %s1908_s11 = scalar_lea.hbm %s2139_s2, %s1106_s24 }
  0x5f   : > { %1227 = vmatpush3.bf16.msra.mxu0 %v1374_v0  ;;  %1282 = vmatpush3.bf16.msra.mxu1 %v1374_v0  ;;  %v240_v5 = vld [vmem:[%s1746_s6 + $0x8] sm:$0xff]  ;;  %v1378_v7 = vld [vmem:[#allocation5 + $0x20] sm:$0xff]   ;;  %v1380_v12 = vld [vmem:[#allocation5 + $0x30] sm:$0xff]   ;;  %s869_s18 = sshll.u32 %s1795_s22, 4  ;;  %s848_s26 = scalar_lea.sflag [#allocation4], %s1742_s27  ;;  %s1914_s18 = int_to_ptr.vmem [resolvable:$true] %s869_s18 }
  0x60   : > { %1228 = vmatprep.subr.bf16.mxu0 %v1375_v1  ;;  %1275 = vmatprep.subr.bf16.mxu1 %v1375_v1  ;;  %v271_v6 = vpack.c.bf16 %v240_v5, %v239_v4  ;;  %v255_v8 = vld [vmem:[%s1746_s6 + $0x80] sm:$0xff]  ;;  %v256_v9 = vld [vmem:[%s1746_s6 + $0x88] sm:$0xff]  ;;  %v1381_v13 = vld [vmem:[#allocation5 + $0x38] sm:$0xff]   ;;  %s1440_s7 = scalar_lea.vmem %s1914_s18, 2048  ;;  %s1566_s8 = smov [#allocation7]  }
  0x61   : > { %v279_v10 = vpack.c.bf16 %v256_v9, %v255_v8  ;;  %v1379_v11 = vld [vmem:[#allocation5 + $0x28] sm:$0xff]   ;;  %v241_v14 = vld [vmem:[%s1746_s6 + $0x10] sm:$0xff]  ;;  %v242_v15 = vld [vmem:[%s1746_s6 + $0x18] sm:$0xff]  ;;  %p1441_p4 = scmp.ne.s32.totalorder %s1914_s18, %s1440_s7  ;;  %s1444_s21 = sshll.u32 %s1566_s8, 4  ;;  %s1445_s21 = int_to_ptr.vmem [resolvable:$false] %s1444_s21 }
  0x62   : > { %1242 = vmatprep.mubr.bf16.mxu0 %v271_v6  ;;  %v243_v16 = vld [vmem:[%s1746_s6 + $0x20] sm:$0xff]  ;;  %v244_v17 = vld [vmem:[%s1746_s6 + $0x28] sm:$0xff]  ;;  %v257_v18 = vld [vmem:[%s1746_s6 + $0x90] sm:$0xff]  ;;  %v272_v22 = vpack.c.bf16 %v242_v15, %v241_v14  ;;  %s1446_s19 = scalar_lea.vmem %s1445_s21, 4096  ;;  %p1447_p12 = scmp.lt.s32.totalorder %s1914_s18, %s1445_s21 }
  0x63   : > { %1229 = vmatpush3.bf16.msra.mxu0 %v1375_v1  ;;  %1283 = vmatpush3.bf16.msra.mxu1 %v1375_v1  ;;  %v258_v19 = vld [vmem:[%s1746_s6 + $0x98] sm:$0xff]  ;;  %v259_v20 = vld [vmem:[%s1746_s6 + $0xa0] sm:$0xff]  ;;  %v260_v21 = vld [vmem:[%s1746_s6 + $0xa8] sm:$0xff]  ;;  %v273_v23 = vpack.c.bf16 %v244_v17, %v243_v16  ;;  %p1442_p6 = pnand %p1441_p4, %p1686_p10  ;;  %p1448_p11 = scmp.lt.s32.totalorder %s1446_s19, %s1440_s7 }
  0x64   : > { %1230 = vmatprep.subr.bf16.mxu0 %v1376_v2  ;;  %1276 = vmatprep.subr.bf16.mxu1 %v1376_v2  ;;  %v280_v24 = vpack.c.bf16 %v258_v19, %v257_v18  ;;  %v281_v25 = vpack.c.bf16 %v260_v21, %v259_v20  ;;  %v245_v26 = vld [vmem:[%s1746_s6 + $0x30] sm:$0xff]  ;;  %v246_v27 = vld [vmem:[%s1746_s6 + $0x38] sm:$0xff]  ;;  %v247_v28 = vld [vmem:[%s1746_s6 + $0x40] sm:$0xff] }
  0x65   : > { %1258 = vmatprep.mubr.bf16.mxu1 %v279_v10  ;;  %v248_v29 = vld [vmem:[%s1746_s6 + $0x48] sm:$0xff]  ;;  %v261_v30 = vld [vmem:[%s1746_s6 + $0xb0] sm:$0xff]  ;;  %v262_v31 = vld [vmem:[%s1746_s6 + $0xb8] sm:$0xff]  ;;  %v274_v34 = vpack.c.bf16 %v246_v27, %v245_v26  ;;  %p1443_p8 = pneg %p1442_p6  ;;  %p1449_p0 = por %p1448_p11, %p1447_p12 }
  0x66   : > { %v263_v32 = vld [vmem:[%s1746_s6 + $0xc0] sm:$0xff]  ;;  %v264_v33 = vld [vmem:[%s1746_s6 + $0xc8] sm:$0xff]  ;;  %v275_v35 = vpack.c.bf16 %v248_v29, %v247_v28  ;;  %v282_v36 = vpack.c.bf16 %v262_v31, %v261_v30  ;;  %v249_v38 = vld [vmem:[%s1746_s6 + $0x50] sm:$0xff] }
  0x67   : > { %1231 = vmatpush3.bf16.msra.mxu0 %v1376_v2  ;;  %1284 = vmatpush3.bf16.msra.mxu1 %v1376_v2  ;;  %v283_v37 = vpack.c.bf16 %v264_v33, %v263_v32  ;;  %v250_v39 = vld [vmem:[%s1746_s6 + $0x58] sm:$0xff]  ;;  %v251_v40 = vld [vmem:[%s1746_s6 + $0x60] sm:$0xff]  ;;  %v252_v41 = vld [vmem:[%s1746_s6 + $0x68] sm:$0xff]  ;;  %p1450_p5 = pnand %p1449_p0, %p1443_p8 }
  0x68   : > { %1232 = vmatprep.subr.bf16.mxu0 %v1377_v3  ;;  %1277 = vmatprep.subr.bf16.mxu1 %v1377_v3  ;;  %v265_v42 = vld [vmem:[%s1746_s6 + $0xd0] sm:$0xff]  ;;  %v266_v43 = vld [vmem:[%s1746_s6 + $0xd8] sm:$0xff]  ;;  %v267_v44 = vld [vmem:[%s1746_s6 + $0xe0] sm:$0xff]  ;;  %v276_v46 = vpack.c.bf16 %v250_v39, %v249_v38  ;;  %v277_v47 = vpack.c.bf16 %v252_v41, %v251_v40 }
  0x69   : > { %v268_v45 = vld [vmem:[%s1746_s6 + $0xe8] sm:$0xff]  ;;  %v284_v48 = vpack.c.bf16 %v266_v43, %v265_v42  ;;  %v253_v50 = vld [vmem:[%s1746_s6 + $0x70] sm:$0xff]  ;;  %v254_v51 = vld [vmem:[%s1746_s6 + $0x78] sm:$0xff] }
  0x6a   : > { %v285_v49 = vpack.c.bf16 %v268_v45, %v267_v44  ;;  %v269_v52 = vld [vmem:[%s1746_s6 + $0xf0] sm:$0xff]  ;;  %v270_v53 = vld [vmem:[%s1746_s6 + $0xf8] sm:$0xff]  ;;  %v278_v54 = vpack.c.bf16 %v254_v51, %v253_v50 }
  0x6b   : > { %1233 = vmatpush3.bf16.msra.mxu0 %v1377_v3  ;;  %1285 = vmatpush3.bf16.msra.mxu1 %v1377_v3  ;;  %v286_v55 = vpack.c.bf16 %v270_v53, %v269_v52 }
  0x6c   : > { %1234 = vmatprep.subr.bf16.mxu0 %v1378_v7  ;;  %1278 = vmatprep.subr.bf16.mxu1 %v1378_v7 }
  0x6f   : > { %1235 = vmatpush3.bf16.msra.mxu0 %v1378_v7  ;;  %1286 = vmatpush3.bf16.msra.mxu1 %v1378_v7 }
  0x70   : > { %1236 = vmatprep.subr.bf16.mxu0 %v1379_v11  ;;  %1279 = vmatprep.subr.bf16.mxu1 %v1379_v11 }
  0x73   : > { %1237 = vmatpush3.bf16.msra.mxu0 %v1379_v11  ;;  %1287 = vmatpush3.bf16.msra.mxu1 %v1379_v11 }
  0x74   : > { %1238 = vmatprep.subr.bf16.mxu0 %v1380_v12  ;;  %1280 = vmatprep.subr.bf16.mxu1 %v1380_v12 }
  0x77   : > { %1239 = vmatpush3.bf16.msra.mxu0 %v1380_v12  ;;  %1288 = vmatpush3.bf16.msra.mxu1 %v1380_v12 }
  0x78   : > { %1240 = vmatprep.subr.bf16.mxu0 %v1381_v13  ;;  %1281 = vmatprep.subr.bf16.mxu1 %v1381_v13 }
  0x7b   : > { %1241 = vmatpush3.bf16.msra.mxu0 %v1381_v13  ;;  %1289 = vmatpush3.bf16.msra.mxu1 %v1381_v13 }
  0x7e   : > { %1243 = vmatmul.mubr.bf16.vlgmr.msra.gmra.mrb[0].mxu0 %v272_v22  ;;  %1259 = vmatmul.mubr.bf16.vlgmr.msra.gmra.mrb[0].mxu1 %v280_v24 }
  0x7f   : > { %1246 = vmatprep.mubr.bf16.mxu0 %v273_v23  ;;  %1262 = vmatprep.mubr.bf16.mxu1 %v281_v25 }
  0x86   : > { %1247 = vmatmul.mubr.bf16.gmra.mrb[4].mxu0 %v274_v34  ;;  %1263 = vmatmul.mubr.bf16.gmra.mrb[4].mxu1 %v282_v36 }
  0x87   : > { %1250 = vmatprep.mubr.bf16.mxu0 %v275_v35  ;;  %1266 = vmatprep.mubr.bf16.mxu1 %v283_v37 }
  0x8e   : > { %1251 = vmatmul.mubr.bf16.gmra.mrb[8].mxu0 %v276_v46  ;;  %1267 = vmatmul.mubr.bf16.gmra.mrb[8].mxu1 %v284_v48 }
  0x8f   : > { %1254 = vmatprep.mubr.bf16.mxu0 %v277_v47  ;;  %1270 = vmatprep.mubr.bf16.mxu1 %v285_v49 }
  0x96   : > { %1255 = vmatmul.mubr.bf16.gmra.mrb[12].mxu0 %v278_v54  ;;  %1271 = vmatmul.mubr.bf16.gmra.mrb[12].mxu1 %v286_v55 }
 0x151   : > { %v1244_v56 = vpop.f32.mrb[0].mxu0  ;;  %v1260_v58 = vpop.f32.mrb[0].mxu1 }
 0x152   : > { %v385_v57 = vpop.f32.mrb[1].mxu0  ;;  %v449_v60 = vpop.f32.mrb[1].mxu1 }
 0x153   : > { %v1245_v59 = vpop.f32.mrb[2].mxu0  ;;  %v1261_v63 = vpop.f32.mrb[2].mxu1 }
 0x154   : > { %v1789_v61 = vpack.c.bf16 %v1245_v59, %v1244_v56  ;;  %v388_v62 = vpop.f32.mrb[3].mxu0  ;;  %v1793_v1 = vpack.c.bf16 %v1261_v63, %v1260_v58  ;;  %v452_v2 = vpop.f32.mrb[3].mxu1 }
 0x155   : > { %v1791_v0 = vpack.c.bf16 %v388_v62, %v385_v57  ;;  %v1799_v3 = vpack.c.bf16 %v452_v2, %v449_v60 }
 0x156   : > { %1187 = vst [vmem:[%s1795_s22 + $0x8] sm:$0xff] %v1789_v61   ;;  %1195 = vst [vmem:[%s1795_s22 + $0x48] sm:$0xff] %v1793_v1   ;;  %v674_v6 = vunpack.c.l.bf16 %v1789_v61  ;;  %v675_v17 = vunpack.c.h.bf16 %v1789_v61 }
 0x157   : > { %1111 = vst [vmem:[%s1795_s22] sm:$0xff] %v1791_v0   ;;  %v672_v4 = vunpack.c.l.bf16 %v1791_v0  ;;  %v673_v5 = vunpack.c.h.bf16 %v1791_v0  ;;  %1194 = vst [vmem:[%s1795_s22 + $0x40] sm:$0xff] %v1799_v3  }
 0x159   : > { %v704_v7 = vadd.f32 %v673_v5, %v672_v4  ;;  %v1248_v8 = vpop.f32.mrb[4].mxu0  ;;  %v1264_v10 = vpop.f32.mrb[4].mxu1 }
 0x15a   : > { %v401_v9 = vpop.f32.mrb[5].mxu0  ;;  %v465_v13 = vpop.f32.mrb[5].mxu1 }
 0x15b   : > { %v705_v11 = vadd.f32 %v704_v7, %v674_v6  ;;  %v1249_v12 = vpop.f32.mrb[6].mxu0  ;;  %v1265_v16 = vpop.f32.mrb[6].mxu1 }
 0x15c   : > { %v1816_v14 = vpack.c.bf16 %v1249_v12, %v1248_v8  ;;  %v404_v15 = vpop.f32.mrb[7].mxu0  ;;  %v1821_v19 = vpack.c.bf16 %v1265_v16, %v1264_v10  ;;  %v468_v20 = vpop.f32.mrb[7].mxu1  ;;  %v689_v16 = vunpack.c.h.bf16 %v1799_v3 }
 0x15d   : > { %v1819_v18 = vpack.c.bf16 %v404_v15, %v401_v9  ;;  %v1825_v21 = vpack.c.bf16 %v468_v20, %v465_v13  ;;  %v706_v23 = vadd.f32 %v705_v11, %v675_v17  ;;  %v688_v13 = vunpack.c.l.bf16 %v1799_v3 }
 0x15e   : > { %1189 = vst [vmem:[%s1795_s22 + $0x18] sm:$0xff] %v1816_v14   ;;  %1197 = vst [vmem:[%s1795_s22 + $0x58] sm:$0xff] %v1821_v19   ;;  %v678_v29 = vunpack.c.l.bf16 %v1816_v14  ;;  %v679_v36 = vunpack.c.h.bf16 %v1816_v14 }
 0x15f   : > { %1188 = vst [vmem:[%s1795_s22 + $0x10] sm:$0xff] %v1819_v18   ;;  %v676_v22 = vunpack.c.l.bf16 %v1819_v18  ;;  %1196 = vst [vmem:[%s1795_s22 + $0x50] sm:$0xff] %v1825_v21   ;;  %v677_v24 = vunpack.c.h.bf16 %v1819_v18 }
 0x161   : > { %v707_v25 = vadd.f32 %v706_v23, %v676_v22  ;;  %v1252_v26 = vpop.f32.mrb[8].mxu0  ;;  %v1268_v28 = vpop.f32.mrb[8].mxu1  ;;  %v690_v23 = vunpack.c.l.bf16 %v1793_v1 }
 0x162   : > { %v417_v27 = vpop.f32.mrb[9].mxu0  ;;  %v481_v32 = vpop.f32.mrb[9].mxu1 }
 0x163   : > { %v708_v30 = vadd.f32 %v707_v25, %v677_v24  ;;  %v1253_v31 = vpop.f32.mrb[10].mxu0  ;;  %v1269_v35 = vpop.f32.mrb[10].mxu1 }
 0x164   : > { %v1842_v33 = vpack.c.bf16 %v1253_v31, %v1252_v26  ;;  %v420_v34 = vpop.f32.mrb[11].mxu0  ;;  %v1849_v39 = vpack.c.bf16 %v1269_v35, %v1268_v28  ;;  %v484_v40 = vpop.f32.mrb[11].mxu1 }
 0x165   : > { %v709_v37 = vadd.f32 %v708_v30, %v678_v29  ;;  %v1847_v38 = vpack.c.bf16 %v420_v34, %v417_v27  ;;  %v1853_v41 = vpack.c.bf16 %v484_v40, %v481_v32 }
 0x166   : > { %1191 = vst [vmem:[%s1795_s22 + $0x28] sm:$0xff] %v1842_v33   ;;  %1199 = vst [vmem:[%s1795_s22 + $0x68] sm:$0xff] %v1849_v39   ;;  %v682_v49 = vunpack.c.l.bf16 %v1842_v33  ;;  %v683_v56 = vunpack.c.h.bf16 %v1842_v33 }
 0x167   : > { %1190 = vst [vmem:[%s1795_s22 + $0x20] sm:$0xff] %v1847_v38   ;;  %v680_v42 = vunpack.c.l.bf16 %v1847_v38  ;;  %v710_v43 = vadd.f32 %v709_v37, %v679_v36  ;;  %1198 = vst [vmem:[%s1795_s22 + $0x60] sm:$0xff] %v1853_v41   ;;  %v681_v44 = vunpack.c.h.bf16 %v1847_v38 }
 0x169   : > { %v711_v45 = vadd.f32 %v710_v43, %v680_v42  ;;  %v1256_v46 = vpop.f32.mrb[12].mxu0  ;;  %v1272_v48 = vpop.f32.mrb[12].mxu1 }
 0x16a   : > { %v433_v47 = vpop.f32.mrb[13].mxu0  ;;  %v497_v52 = vpop.f32.mrb[13].mxu1 }
 0x16b   : > { %v712_v50 = vadd.f32 %v711_v45, %v681_v44  ;;  %v1257_v51 = vpop.f32.mrb[14].mxu0  ;;  %v1273_v55 = vpop.f32.mrb[14].mxu1 }
 0x16c   : > { %v1870_v53 = vpack.c.bf16 %v1257_v51, %v1256_v46  ;;  %v436_v54 = vpop.f32.mrb[15].mxu0  ;;  %v1877_v59 = vpack.c.bf16 %v1273_v55, %v1272_v48  ;;  %v500_v60 = vpop.f32.mrb[15].mxu1 }
 0x16d   : > { %v713_v57 = vadd.f32 %v712_v50, %v682_v49  ;;  %v1875_v58 = vpack.c.bf16 %v436_v54, %v433_v47  ;;  %v1881_v62 = vpack.c.bf16 %v500_v60, %v497_v52 }
 0x16e   : > { %1193 = vst [vmem:[%s1795_s22 + $0x38] sm:$0xff] %v1870_v53   ;;  %1201 = vst [vmem:[%s1795_s22 + $0x78] sm:$0xff] %v1877_v59   ;;  %v686_v9 = vunpack.c.l.bf16 %v1870_v53  ;;  %v687_v11 = vunpack.c.h.bf16 %v1870_v53 }
 0x16f   : > { %1192 = vst [vmem:[%s1795_s22 + $0x30] sm:$0xff] %v1875_v58   ;;  %v684_v63 = vunpack.c.l.bf16 %v1875_v58  ;;  %v714_v2 = vadd.f32 %v713_v57, %v683_v56  ;;  %1200 = vst [vmem:[%s1795_s22 + $0x70] sm:$0xff] %v1881_v62   ;;  %v685_v7 = vunpack.c.h.bf16 %v1875_v58 }
 0x171   : > { %v715_v8 = vadd.f32 %v714_v2, %v684_v63 }
 0x173   : > { %v716_v10 = vadd.f32 %v715_v8, %v685_v7 }
 0x175   : > { %v717_v12 = vadd.f32 %v716_v10, %v686_v9 }
 0x177   : > { %v718_v15 = vadd.f32 %v717_v12, %v687_v11 }
 0x179   : > { %v719_v20 = vadd.f32 %v718_v15, %v688_v13 }
 0x17b   : > { %v720_v25 = vadd.f32 %v719_v20, %v689_v16 }
 0x17c   : > { %1453 = shalt.err (!%p1450_p5)
}
 0x17d   : > { %s1454_s25 = scalar_lea.hbm %s1908_s11, 2048  ;;  %s1458_s6 = scalar_lea.hbm %s2139_s2, 4096 }
 0x17e   : > { %p1455_p9 = scmp.ne.s32.totalorder %s1908_s11, %s1454_s25  ;;  %p1459_p3 = scmp.lt.u32.totalorder %s1908_s11, %s2139_s2 }
 0x17f   : > { %p1460_p7 = scmp.lt.u32.totalorder %s1458_s6, %s1454_s25  ;;  %p1462_p4 = scmp.lt.u32.totalorder %s1454_s25, %s1908_s11 }
 0x180   : > { %p1456_p1 = pnand %p1455_p9, %p1686_p10 }
 0x181   : > { %p1461_p13 = por %p1460_p7, %p1459_p3 }
 0x182   : > { %p1457_p2 = pneg %p1456_p1 }
 0x183   : > { %p1463_p6 = por %p1462_p4, %p1461_p13 }
 0x185   : > { %p1464_p8 = pnand %p1463_p6, %p1457_p2 }
 0x187   : > { %1467 = shalt.err (!%p1464_p8)
}
 0x188   : > { %s1567_s24 = smov 64   ;;  %s1568_s9 = smov 4   ;;  %v691_v26 = vunpack.c.h.bf16 %v1793_v1  ;;  %v721_v27 = vadd.f32 %v720_v25, %v690_v23  ;;  %v692_v28 = vunpack.c.l.bf16 %v1825_v21  ;;  %v693_v31 = vunpack.c.h.bf16 %v1825_v21 }
 0x189   : > { %1296 = dma.vmem_to_hbm [thread:$0]  (%p1686_p10), %s1914_s18, 2048, %s1908_s11, %s848_s26, %s1567_s24, %s1567_s24, %s1568_s9   ;;  %v694_v34 = vunpack.c.l.bf16 %v1821_v19  ;;  %v695_v37 = vunpack.c.h.bf16 %v1821_v19  ;;  %v696_v43 = vunpack.c.l.bf16 %v1853_v41  ;;  %v697_v46 = vunpack.c.h.bf16 %v1853_v41 }
 0x18a   : > { %v722_v30 = vadd.f32 %v721_v27, %v691_v26  ;;  %v698_v48 = vunpack.c.l.bf16 %v1849_v39  ;;  %v699_v51 = vunpack.c.h.bf16 %v1849_v39  ;;  %v700_v54 = vunpack.c.l.bf16 %v1881_v62  ;;  %s1025_s10 = sshll.u32 %s1742_s27, 1  ;;  %s1070_s11 = sshll.u32 %s1550_s15, 5 }
 0x18b   : > { %v701_v57 = vunpack.c.h.bf16 %v1881_v62  ;;  %v702_v2 = vunpack.c.l.bf16 %v1877_v59  ;;  %v703_v10 = vunpack.c.h.bf16 %v1877_v59  ;;  %s235_s18 = scalar_lea.vmem [#allocation8], %s1025_s10  ;;  %vm844_vm0 = vcmask 1040384   ;;  %s2087_s21 = scalar_lea.hbm %s2140_s3, %s1070_s11 }
 0x18c   : > { %v723_v32 = vadd.f32 %v722_v30, %v692_v28  ;;  %s886_s26 = sshll.u32 %s235_s18, 4  ;;  %s853_s19 = scalar_lea.sflag [#allocation9], %s1742_s27  ;;  %s2089_s26 = int_to_ptr.vmem [resolvable:$true] %s886_s26 }
 0x18d   : > { %s1468_s25 = scalar_lea.vmem %s2089_s26, 32  ;;  %s1569_s15 = smov [#allocation8]  }
 0x18e   : > { %v724_v35 = vadd.f32 %v723_v32, %v693_v31  ;;  %p1469_p12 = scmp.ne.s32.totalorder %s2089_s26, %s1468_s25  ;;  %s1472_s29 = sshll.u32 %s1569_s15, 4  ;;  %s1473_s29 = int_to_ptr.vmem [resolvable:$false] %s1472_s29 }
 0x18f   : > { %s1474_s4 = scalar_lea.vmem %s1473_s29, 64  ;;  %p1475_p5 = scmp.lt.s32.totalorder %s2089_s26, %s1473_s29 }
 0x190   : > { %v725_v40 = vadd.f32 %v724_v35, %v694_v34  ;;  %p1470_p11 = pnand %p1469_p12, %p1686_p10  ;;  %p1476_p9 = scmp.lt.s32.totalorder %s1474_s4, %s1468_s25 }
 0x192   : > { %v726_v45 = vadd.f32 %v725_v40, %v695_v37  ;;  %p1471_p0 = pneg %p1470_p11  ;;  %p1477_p1 = por %p1476_p9, %p1475_p5 }
 0x194   : > { %v727_v47 = vadd.f32 %v726_v45, %v696_v43  ;;  %p1478_p2 = pnand %p1477_p1, %p1471_p0 }
 0x196   : > { %v728_v50 = vadd.f32 %v727_v47, %v697_v46 }
 0x198   : > { %v729_v52 = vadd.f32 %v728_v50, %v698_v48 }
 0x19a   : > { %v730_v55 = vadd.f32 %v729_v52, %v699_v51 }
 0x19c   : > { %v731_v60 = vadd.f32 %v730_v55, %v700_v54 }
 0x19e   : > { %v732_v8 = vadd.f32 %v731_v60, %v701_v57 }
 0x1a0   : > { %v733_v12 = vadd.f32 %v732_v8, %v702_v2 }
 0x1a2   : > { %v734_v15 = vadd.f32 %v733_v12, %v703_v10 }
 0x1a4   : > { %v735_v20 = vrot.slane %v734_v15, 4 }
 0x1a6   : > { %v736_v25 = vadd.f32 %v735_v20, %v734_v15 }
 0x1a8   : > { %v737_v27 = vrot.slane %v736_v25, 2 }
 0x1aa   : > { %v738_v30 = vadd.f32 %v737_v27, %v736_v25 }
 0x1ac   : > { %v739_v32 = vrot.slane %v738_v30, 1 }
 0x1ae   : > { %v740_v35 = vadd.f32 %v739_v32, %v738_v30 }
 0x1b0   : > { %v1984_v40 = vmul.f32 0.00390625, %v740_v35 }
 0x1b2   : > { %v743_v45 = vsub.f32 %v672_v4, %v1984_v40  ;;  %v744_v47 = vsub.f32 %v673_v5, %v1984_v40  ;;  %v745_v50 = vsub.f32 %v674_v6, %v1984_v40  ;;  %v746_v60 = vsub.f32 %v675_v17, %v1984_v40 }
 0x1b3   : > { %v747_v8 = vsub.f32 %v676_v22, %v1984_v40  ;;  %v748_v0 = vsub.f32 %v677_v24, %v1984_v40  ;;  %v749_v6 = vsub.f32 %v678_v29, %v1984_v40  ;;  %v750_v61 = vsub.f32 %v679_v36, %v1984_v40 }
 0x1b4   : > { %v775_v52 = vmul.f32 %v743_v45, %v743_v45  ;;  %v776_v55 = vmul.f32 %v744_v47, %v744_v47  ;;  %v777_v12 = vmul.f32 %v745_v50, %v745_v50  ;;  %v778_v5 = vmul.f32 %v746_v60, %v746_v60 }
 0x1b5   : > { %v779_v20 = vmul.f32 %v747_v8, %v747_v8  ;;  %v780_v17 = vmul.f32 %v748_v0, %v748_v0  ;;  %v751_v27 = vsub.f32 %v680_v42, %v1984_v40  ;;  %v781_v18 = vmul.f32 %v749_v6, %v749_v6 }
 0x1b6   : > { %v807_v4 = vadd.f32 %v776_v55, %v775_v52  ;;  %v752_v30 = vsub.f32 %v681_v44, %v1984_v40  ;;  %v782_v32 = vmul.f32 %v750_v61, %v750_v61  ;;  %v753_v35 = vsub.f32 %v682_v49, %v1984_v40 }
 0x1b7   : > { %v783_v14 = vmul.f32 %v751_v27, %v751_v27  ;;  %v754_v45 = vsub.f32 %v683_v56, %v1984_v40  ;;  %v755_v50 = vsub.f32 %v684_v63, %v1984_v40  ;;  %v756_v52 = vsub.f32 %v685_v7, %v1984_v40 }
 0x1b8   : > { %v808_v15 = vadd.f32 %v807_v4, %v777_v12  ;;  %v784_v47 = vmul.f32 %v752_v30, %v752_v30  ;;  %v785_v38 = vmul.f32 %v753_v35, %v753_v35  ;;  %v757_v60 = vsub.f32 %v686_v9, %v1984_v40 }
 0x1b9   : > { %v786_v55 = vmul.f32 %v754_v45, %v754_v45  ;;  %v787_v33 = vmul.f32 %v755_v50, %v755_v50  ;;  %v758_v8 = vsub.f32 %v687_v11, %v1984_v40  ;;  %v788_v12 = vmul.f32 %v756_v52, %v756_v52 }
 0x1ba   : > { %v809_v25 = vadd.f32 %v808_v15, %v778_v5  ;;  %v759_v4 = vsub.f32 %v688_v13, %v1984_v40  ;;  %v789_v58 = vmul.f32 %v757_v60, %v757_v60  ;;  %v760_v0 = vsub.f32 %v689_v16, %v1984_v40 }
 0x1bb   : > { %v790_v5 = vmul.f32 %v758_v8, %v758_v8  ;;  %v761_v15 = vsub.f32 %v690_v23, %v1984_v40  ;;  %v762_v6 = vsub.f32 %v691_v26, %v1984_v40  ;;  %v764_v61 = vsub.f32 %v693_v31, %v1984_v40 }
 0x1bc   : > { %v810_v22 = vadd.f32 %v809_v25, %v779_v20  ;;  %v791_v53 = vmul.f32 %v759_v4, %v759_v4  ;;  %v792_v20 = vmul.f32 %v760_v0, %v760_v0  ;;  %v763_v25 = vsub.f32 %v692_v28, %v1984_v40 }
 0x1bd   : > { %v793_v3 = vmul.f32 %v761_v15, %v761_v15  ;;  %v766_v27 = vsub.f32 %v695_v37, %v1984_v40  ;;  %v768_v30 = vsub.f32 %v697_v46, %v1984_v40  ;;  %v770_v35 = vsub.f32 %v699_v51, %v1984_v40 }
 0x1be   : > { %v811_v24 = vadd.f32 %v810_v22, %v780_v17  ;;  %v794_v17 = vmul.f32 %v762_v6, %v762_v6  ;;  %v765_v22 = vsub.f32 %v694_v34, %v1984_v40  ;;  %v795_v1 = vmul.f32 %v763_v25, %v763_v25 }
 0x1bf   : > { %v772_v45 = vsub.f32 %v701_v57, %v1984_v40  ;;  %v773_v39 = vsub.f32 %v702_v2, %v1984_v40 }
 0x1c0   : > { %v812_v29 = vadd.f32 %v811_v24, %v781_v18  ;;  %v796_v18 = vmul.f32 %v764_v61, %v764_v61  ;;  %v767_v24 = vsub.f32 %v696_v43, %v1984_v40  ;;  %v797_v21 = vmul.f32 %v765_v22, %v765_v22 }
 0x1c1   : > { %v804_v50 = vmul.f32 %v772_v45, %v772_v45 }
 0x1c2   : > { %v813_v36 = vadd.f32 %v812_v29, %v782_v32  ;;  %v798_v32 = vmul.f32 %v766_v27, %v766_v27  ;;  %v769_v29 = vsub.f32 %v698_v48, %v1984_v40  ;;  %v799_v19 = vmul.f32 %v767_v24, %v767_v24 }
 0x1c3   : > { %v802_v48 = vmul.f32 %v770_v35, %v770_v35 }
 0x1c4   : > { %v814_v42 = vadd.f32 %v813_v36, %v783_v14  ;;  %v800_v14 = vmul.f32 %v768_v30, %v768_v30  ;;  %v771_v36 = vsub.f32 %v700_v54, %v1984_v40  ;;  %v801_v41 = vmul.f32 %v769_v29, %v769_v29 }
 0x1c5   : > { %v774_v54 = vsub.f32 %v703_v10, %v1984_v40 }
 0x1c6   : > { %v815_v44 = vadd.f32 %v814_v42, %v784_v47  ;;  %v803_v51 = vmul.f32 %v771_v36, %v771_v36 }
 0x1c7   : > { %v806_v62 = vmul.f32 %v774_v54, %v774_v54 }
 0x1c8   : > { %v816_v49 = vadd.f32 %v815_v44, %v785_v38  ;;  %v805_v44 = vmul.f32 %v773_v39, %v773_v39 }
 0x1ca   : > { %v817_v56 = vadd.f32 %v816_v49, %v786_v55 }
 0x1cc   : > { %v818_v63 = vadd.f32 %v817_v56, %v787_v33 }
 0x1ce   : > { %v819_v7 = vadd.f32 %v818_v63, %v788_v12 }
 0x1d0   : > { %v820_v9 = vadd.f32 %v819_v7, %v789_v58 }
 0x1d2   : > { %v821_v11 = vadd.f32 %v820_v9, %v790_v5 }
 0x1d4   : > { %v822_v13 = vadd.f32 %v821_v11, %v791_v53 }
 0x1d6   : > { %v823_v16 = vadd.f32 %v822_v13, %v792_v20 }
 0x1d8   : > { %v824_v23 = vadd.f32 %v823_v16, %v793_v3 }
 0x1da   : > { %v825_v26 = vadd.f32 %v824_v23, %v794_v17 }
 0x1dc   : > { %v826_v28 = vadd.f32 %v825_v26, %v795_v1 }
 0x1de   : > { %v827_v31 = vadd.f32 %v826_v28, %v796_v18 }
 0x1e0   : > { %v828_v34 = vadd.f32 %v827_v31, %v797_v21 }
 0x1e2   : > { %v829_v37 = vadd.f32 %v828_v34, %v798_v32 }
 0x1e4   : > { %v830_v43 = vadd.f32 %v829_v37, %v799_v19 }
 0x1e6   : > { %v831_v46 = vadd.f32 %v830_v43, %v800_v14 }
 0x1e8   : > { %v832_v47 = vadd.f32 %v831_v46, %v801_v41 }
 0x1ea   : > { %v833_v42 = vadd.f32 %v832_v47, %v802_v48 }
 0x1ec   : > { %v834_v38 = vadd.f32 %v833_v42, %v803_v51 }
 0x1ee   : > { %v835_v52 = vadd.f32 %v834_v38, %v804_v50 }
 0x1f0   : > { %v836_v57 = vadd.f32 %v835_v52, %v805_v44 }
 0x1f2   : > { %v837_v55 = vadd.f32 %v836_v57, %v806_v62 }
 0x1f4   : > { %v838_v49 = vrot.slane %v837_v55, 4 }
 0x1f6   : > { %v839_v60 = vadd.f32 %v838_v49, %v837_v55 }
 0x1f8   : > { %v840_v2 = vrot.slane %v839_v60, 2 }
 0x1fa   : > { %v841_v33 = vadd.f32 %v840_v2, %v839_v60 }
 0x1fc   : > { %v842_v56 = vrot.slane %v841_v33, 1 }
 0x1fe   : > { %v843_v59 = vadd.f32 %v842_v56, %v841_v33 }
 0x200   : > { %v845_v10 = vsel %vm844_vm0, %v1984_v40, %v843_v59 }
 0x201   : > { %846 = vst [vmem:[%s235_s18] sm:$0x3] %v845_v10 }
 0x202   : > { %1481 = shalt.err (!%p1478_p2)
}
 0x203   : > { %s1482_s27 = scalar_lea.hbm %s2087_s21, 32  ;;  %s1486_s22 = scalar_lea.hbm %s2140_s3, 64 }
 0x204   : > { %p1483_p3 = scmp.ne.s32.totalorder %s2087_s21, %s1482_s27  ;;  %p1487_p4 = scmp.lt.u32.totalorder %s2087_s21, %s2140_s3 }
 0x205   : > { %p1488_p6 = scmp.lt.u32.totalorder %s1486_s22, %s1482_s27  ;;  %p1490_p12 = scmp.lt.u32.totalorder %s1482_s27, %s2087_s21 }
 0x206   : > { %p1484_p7 = pnand %p1483_p3, %p1686_p10 }
 0x207   : > { %p1489_p8 = por %p1488_p6, %p1487_p4 }
 0x208   : > { %p1485_p13 = pneg %p1484_p7 }
 0x209   : > { %p1491_p11 = por %p1490_p12, %p1489_p8 }
 0x20b   : > { %p1492_p0 = pnand %p1491_p11, %p1485_p13 }
 0x20d   : > { %1495 = shalt.err (!%p1492_p0)
}
 0x20e   : > { %1297 = dma.vmem_to_hbm [thread:$0]  (%p1686_p10), %s2089_s26, 32, %s2087_s21, %s853_s19  }
 0x20f PF: > { %s898_s10 = sand.u32 1, %s1538_s12   ;;  %p2158_p5 = scmp.ne.s32.totalorder %s2148_s23, 0 }
 0x210   : > { %p2159_p9 = scmp.ge.s32.totalorder %s1558_s17, 2  ;;  %s899_s11 = scalar_lea.sflag [#allocation4], %s898_s10 }
 0x212   : > { %p1309_p1 = pnand %p2159_p9, %p2158_p5 }
 0x214   : > { %1529 = dma.done.wait (!%p1309_p1), %s899_s11, 2048  }
 0x215   : > { %1531 = vsyncadd (!%p1309_p1), %s899_s11, 4294965248  ;;  %s908_s18 = scalar_lea.sflag [#allocation9], %s898_s10 }
 0x216   : > { %1533 = dma.done.wait (!%p1309_p1), %s908_s18, 32  }
 0x217   : > { %1535 = vsyncadd (!%p1309_p1), %s908_s18, 4294967264  ;;  %s24_s17 = sadd.s32 1, %s1558_s17   ;;  %s2160_s12 = smov %s1542_s13 }
 0x218   : > { %p21_p2 = scmp.ge.s32.totalorder %s24_s17, 4   ;;  %s2161_s13 = smov %s1546_s14 }
 0x219   : > { %s2162_s14 = smov %s1695_s5  ;;  %s2163_s15 = smov %s1554_s16 }
 0x21a   : > { %s2164_s16 = smov %s2166_s28  ;;  %23 = sbr.rel (!%p21_p2) target bundleno = 9 (0x9), region = 94 }
 0x221   :  { %913 = vsyncpa [#allocation3], 1 }
 0x222   :  { %915 = vsyncpa [#allocation3 + $0x1], 1 }
 0x223   :  { %916 = vsyncpa [#allocation6], 1 }
 0x224   :  { %917 = vsyncpa [#allocation4], 1 }
 0x225   :  { %919 = vsyncpa [#allocation4 + $0x1], 1 }
 0x226   :  { %920 = vsyncpa [#allocation9], 1 }
 0x227   :  { %922 = vsyncpa [#allocation9 + $0x1], 1 }

</bundles_post_ra>
